<compile_context>
chip_gen: v5e
topology: v5e:2x2
jax: 0.10.0
libtpu: 0.0.40
codegen_flags: <defaults>
</compile_context>

<pallas_src>
import functools

import numpy as np
import jax
import jax.numpy as jnp
from jax.experimental import pallas as pl
from jax.experimental.pallas import tpu as pltpu


def _round_up(a: int, m: int) -> int:
    return (a + m - 1) // m * m


def _embed_gather_kernel(idx_ref, table_ref, out_ref, *, scale):
    """Gather a block of rows from the VMEM-resident table, scaled by sqrt(d_model).

    idx_ref:   (TILE, 1)        int32   token indices for this block
    table_ref: (vocab_p, d_pad) float32 full (padded) embedding table, resident in VMEM
    out_ref:   (TILE, d_pad)    float32 gathered + scaled embeddings
    """
    idx = idx_ref[...]                                       # (TILE, 1) int32
    tile = idx.shape[0]
    vocab_p = table_ref.shape[0]

    # One-hot selection matrix built on the VPU (iota + compare); the sqrt(d_model)
    # scale is folded into the selection values so the MXU emits scaled rows directly.
    iota = jax.lax.broadcasted_iota(jnp.int32, (tile, vocab_p), 1)
    sel = jnp.where(iota == idx,
                    jnp.asarray(scale, table_ref.dtype),
                    jnp.asarray(0, table_ref.dtype))          # (TILE, vocab_p)

    gathered = jnp.dot(sel, table_ref[...],
                       preferred_element_type=jnp.float32)    # (TILE, d_pad)
    out_ref[...] = gathered.astype(out_ref.dtype)


def embedding_forward(x: jnp.ndarray, weight: jnp.ndarray, *, tile_rows: int = 512) -> jnp.ndarray:
    """Pallas equivalent of Embedding.forward: weight[x] * sqrt(d_model)."""
    B, S = x.shape
    vocab, d_model = weight.shape
    scale = float(np.sqrt(d_model))

    n = B * S
    # Flattened positions per grid step: multiple of 8 (sublane-dense), capped at
    # `tile_rows` to keep the per-step one-hot / output tiles VMEM-friendly.
    tile = min(_round_up(tile_rows, 8), _round_up(n, 8))
    n_pad = _round_up(n, tile)

    # Pad the table so the contraction dim (vocab) and the output lane dim (d) are
    # MXU / vreg friendly.
    vocab_p = _round_up(vocab, 128)
    d_pad = _round_up(d_model, 128)

    flat_idx = x.reshape(-1).astype(jnp.int32)
    flat_idx = jnp.pad(flat_idx, (0, n_pad - n))[:, None]          # (n_pad, 1); pad rows -> row 0

    table = jnp.pad(weight.astype(jnp.float32),
                    ((0, vocab_p - vocab), (0, d_pad - d_model)))  # (vocab_p, d_pad)

    grid = (n_pad // tile,)
    out = pl.pallas_call(
        functools.partial(_embed_gather_kernel, scale=scale),
        out_shape=jax.ShapeDtypeStruct((n_pad, d_pad), weight.dtype),
        grid=grid,
        in_specs=[
            # Block of indices for this grid step (sublane-dense, full lane extent).
            pl.BlockSpec((tile, 1), lambda i: (i, 0)),
            # Whole (padded) table resident in VMEM; constant block index -> DMA'd once.
            pl.BlockSpec((vocab_p, d_pad), lambda i: (0, 0)),
        ],
        # Lane-dense (d_pad % 128 == 0) and sublane-dense (tile % 8 == 0) output blocks
        # -> unmasked vector stores.
        out_specs=pl.BlockSpec((tile, d_pad), lambda i: (i, 0)),
        compiler_params=pltpu.CompilerParams(
            dimension_semantics=("parallel",),   # independent row blocks -> v7x megacore
        ),
    )(flat_idx, table)

    return out[:n, :d_model].reshape(B, S, d_model)


if __name__ == "__main__":
    # Small shapes consistent with the module: batch=2, seq=8, hidden (d_model)=32.
    vocab_len, d_model = 17, 32
    batch, seq = 2, 8
    padding_idx = 1  # forward of nn.Embedding is a pure gather; padding_idx only affects grads/init

    key = jax.random.PRNGKey(0)
    k_w, k_x = jax.random.split(key)
    # Stand-in for TEXT.vocab.vectors copied into the embedding weight.
    weight = jax.random.normal(k_w, (vocab_len, d_model), dtype=jnp.float32)
    x = jax.random.randint(k_x, (batch, seq), minval=0, maxval=vocab_len, dtype=jnp.int32)

    out = embedding_forward(x, weight)
    out = jax.block_until_ready(out)

    # Reference: pure-JAX gather + sqrt(d_model) scale (matches the PyTorch forward).
    ref = jnp.take(weight, x, axis=0) * np.float32(np.sqrt(d_model))
    assert out.shape == (batch, seq, d_model)
    assert out.dtype == jnp.float32
    np.testing.assert_allclose(np.asarray(out), np.asarray(ref), rtol=1e-6, atol=1e-6)

    print("KERNEL_OK")
</pallas_src>

<mosaic_0001>
module attributes {stable_mosaic.version = 11 : i64} {
  func.func @_embed_gather_kernel(%arg0: i32, %arg1: memref<16x1xi32, #tpu.memory_space<vmem>>, %arg2: memref<128x128xf32, #tpu.memory_space<vmem>>, %arg3: memref<16x128xf32, #tpu.memory_space<vmem>>) attributes {dimension_semantics = [#tpu.dimension_semantics<parallel>], iteration_bounds = array<i64: 1>, scalar_prefetch = 0 : i64, scratch_operands = 0 : i64, tpu.core_type = #tpu.core_type<tc>, window_params = [{transform_indices = @transform_0, window_bounds = array<i64: 16, 1>}, {pipeline_mode = #tpu.pipeline_mode<synchronous>, transform_indices = @transform_1, window_bounds = array<i64: 128, 128>}, {transform_indices = @transform_2, window_bounds = array<i64: 16, 128>}]} {
    %c0 = arith.constant 0 : index
    %c0_0 = arith.constant 0 : index
    %0 = vector.load %arg1[%c0, %c0_0] : memref<16x1xi32, #tpu.memory_space<vmem>>, vector<16x1xi32>
    %1 = tpu.iota {dimensions = array<i32: 1>} : vector<16x128xi32>
    %2 = vector.broadcast %0 : vector<16x1xi32> to vector<16x128xi32>
    %3 = arith.cmpi eq, %1, %2 : vector<16x128xi32>
    %cst = arith.constant 5.65685415 : f32
    %cst_1 = arith.constant 0.000000e+00 : f32
    %4 = vector.broadcast %cst : f32 to vector<16x128xf32>
    %5 = vector.broadcast %cst_1 : f32 to vector<16x128xf32>
    %6 = arith.select %3, %4, %5 : vector<16x128xi1>, vector<16x128xf32>
    %c0_2 = arith.constant 0 : index
    %c0_3 = arith.constant 0 : index
    %7 = vector.load %arg2[%c0_2, %c0_3] : memref<128x128xf32, #tpu.memory_space<vmem>>, vector<128x128xf32>
    %cst_4 = arith.constant dense<0.000000e+00> : vector<16x128xf32>
    %8 = tpu.matmul %6, %7, %cst_4 {dimension_numbers = #tpu.dot_dimension_numbers<[1], [0], [0], [1], [0, 0, 1, 1], [], []>} : vector<16x128xf32>, vector<128x128xf32>, vector<16x128xf32> -> vector<16x128xf32>
    %c0_5 = arith.constant 0 : index
    %c0_6 = arith.constant 0 : index
    %9 = vector.load %arg3[%c0_5, %c0_6] : memref<16x128xf32, #tpu.memory_space<vmem>>, vector<16x128xf32>
    tpu.vector_store %arg3[%c0_5, %c0_6], %8 {strides = array<i32>} : memref<16x128xf32, #tpu.memory_space<vmem>>, vector<16x128xf32>,
    return
  }
  func.func @transform_0(%arg0: i32) -> (i32, i32) {
    %c0_i32 = arith.constant 0 : i32
    %c0_i32_0 = arith.constant 0 : i32
    return %arg0, %c0_i32 : i32, i32
  }
  func.func @transform_1(%arg0: i32) -> (i32, i32) {
    %c0_i32 = arith.constant 0 : i32
    %c0_i32_0 = arith.constant 0 : i32
    %c0_i32_1 = arith.constant 0 : i32
    return %c0_i32, %c0_i32_0 : i32, i32
  }
  func.func @transform_2(%arg0: i32) -> (i32, i32) {
    %c0_i32 = arith.constant 0 : i32
    %c0_i32_0 = arith.constant 0 : i32
    return %arg0, %c0_i32 : i32, i32
  }
}

</mosaic_0001>

<bundles_post_ra>
// kernel: tpu_custom_call.1
= control target key start
LH: loop header
LB: loop body
LE: loop exit
PB: predicated region body
PF: predicated region fallthrough
CT: control target
= control target key end

     0   :  { %7 = vsyncpa [#allocation3], 0  ;;  %s218_s0 = inlined_call_operand.vmem [shape: s32[16,1], index: 0, kind: input, shape index: {}]   ;;  %s219_s1 = inlined_call_operand.hbm [shape: f32[128,128], index: 1, kind: input, shape index: {}]   ;;  %s220_s2 = inlined_call_operand.hbm [shape: f32[16,128], index: 2, kind: output, shape index: {}]  }
   0x1   :  { %8 = vsyncpa [#allocation4], 0  ;;  %s15_s11 = sshll.u32 %s219_s1, 4  ;;  %s179_s12 = smov [#allocation2]   ;;  %s16_s11 = int_to_ptr.hbm [resolvable:$true] %s15_s11 }
   0x2   :  { %s17_s13 = sshll.u32 %s179_s12, 4  ;;  %s180_s14 = smov 128   ;;  %s18_s13 = int_to_ptr.vmem [resolvable:$true] %s17_s13 }
   0x3   :  { %s181_s15 = smov 8  }
   0x4   :  { %23 = dma.hbm_to_vmem [thread:$0]  %s16_s11, 2048, %s18_s13, [#allocation3], %s180_s14, %s180_s14, %s181_s15  }
   0x5   :  { %175 = dma.done.wait [#allocation3], 2048  }
   0x6   :  { %176 = vsyncadd [#allocation3], 4294965248  ;;  %v182_v0 = vmov 0   ;;  %v28_v1 = vld [vmem:[%s218_s0] sm:$0xff]  ;;  %v57_v2 = vld [vmem:[#allocation2 + $0x78] sm:$0xff]  ;;  %v30_v19 = vlaneseq  ;;  %s89_s22 = sshll.u32 %s220_s2, 4  ;;  %s90_s22 = int_to_ptr.hbm [resolvable:$true] %s89_s22 }
   0x7   :  { %126 = vset.pattern.permute.xlu0 %v182_v0  ;;  %58 = vmatpush.msra.mxu0 %v57_v2  ;;  %v56_v3 = vld [vmem:[#allocation2 + $0x70] sm:$0xff]  ;;  %v55_v4 = vld [vmem:[#allocation2 + $0x68] sm:$0xff]  ;;  %v54_v5 = vld [vmem:[#allocation2 + $0x60] sm:$0xff]  ;;  %v183_v22 = vmov 5.656854  }
   0x8   :  { %33 = vperm.xlu0 %126, %v28_v1   ;;  %104 = vmatpush.msra.mxu1 %v57_v2  ;;  %v29_v6 = vld [vmem:[%s218_s0 + $0x8] sm:$0xff]  ;;  %v53_v7 = vld [vmem:[#allocation2 + $0x58] sm:$0xff]  ;;  %v52_v8 = vld [vmem:[#allocation2 + $0x50] sm:$0xff]  ;;  %v31_v20 = vand.u32 127, %v30_v19  ;;  %s184_s0 = smov [#allocation5]  }
   0x9   :  { %59 = vmatpush.msra.mxu0 %v56_v3  ;;  %v51_v9 = vld [vmem:[#allocation2 + $0x48] sm:$0xff]  ;;  %v50_v10 = vld [vmem:[#allocation2 + $0x40] sm:$0xff]  ;;  %v49_v11 = vld [vmem:[#allocation2 + $0x38] sm:$0xff]  ;;  %s87_s19 = sshll.u32 %s184_s0, 4  ;;  %s88_s19 = int_to_ptr.vmem [resolvable:$true] %s87_s19 }
   0xa   :  { %105 = vmatpush.msra.mxu1 %v56_v3  ;;  %v48_v12 = vld [vmem:[#allocation2 + $0x30] sm:$0xff]  ;;  %v47_v13 = vld [vmem:[#allocation2 + $0x28] sm:$0xff]  ;;  %v46_v14 = vld [vmem:[#allocation2 + $0x20] sm:$0xff] }
   0xb   :  { %60 = vmatpush.msra.mxu0 %v55_v4  ;;  %v45_v15 = vld [vmem:[#allocation2 + $0x18] sm:$0xff]  ;;  %v44_v16 = vld [vmem:[#allocation2 + $0x10] sm:$0xff]  ;;  %v43_v17 = vld [vmem:[#allocation2 + $0x8] sm:$0xff] }
   0xc   :  { %106 = vmatpush.msra.mxu1 %v55_v4  ;;  %v42_v18 = vld [vmem:[#allocation2] sm:$0xff] }
   0xd   :  { %61 = vmatpush.msra.mxu0 %v54_v5 }
   0xe   :  { %107 = vmatpush.msra.mxu1 %v54_v5 }
   0xf   :  { %62 = vmatpush.msra.mxu0 %v53_v7 }
  0x10   :  { %36 = vperm.xlu0 %126, %v29_v6   ;;  %108 = vmatpush.msra.mxu1 %v53_v7 }
  0x11   :  { %63 = vmatpush.msra.mxu0 %v52_v8 }
  0x12   :  { %109 = vmatpush.msra.mxu1 %v52_v8 }
  0x13   :  { %64 = vmatpush.msra.mxu0 %v51_v9 }
  0x14   :  { %110 = vmatpush.msra.mxu1 %v51_v9 }
  0x15   :  { %65 = vmatpush.msra.mxu0 %v50_v10 }
  0x16   :  { %111 = vmatpush.msra.mxu1 %v50_v10 }
  0x17   :  { %66 = vmatpush.msra.mxu0 %v49_v11 }
  0x18   :  { %112 = vmatpush.msra.mxu1 %v49_v11 }
  0x19   :  { %67 = vmatpush.msra.mxu0 %v48_v12 }
  0x1a   :  { %113 = vmatpush.msra.mxu1 %v48_v12 }
  0x1b   :  { %68 = vmatpush.msra.mxu0 %v47_v13 }
  0x1c   :  { %114 = vmatpush.msra.mxu1 %v47_v13 }
  0x1d   :  { %69 = vmatpush.msra.mxu0 %v46_v14 }
  0x1e   :  { %115 = vmatpush.msra.mxu1 %v46_v14 }
  0x1f   :  { %70 = vmatpush.msra.mxu0 %v45_v15 }
  0x20   :  { %116 = vmatpush.msra.mxu1 %v45_v15 }
  0x21   :  { %71 = vmatpush.msra.mxu0 %v44_v16 }
  0x22   :  { %117 = vmatpush.msra.mxu1 %v44_v16 }
  0x23   :  { %72 = vmatpush.msra.mxu0 %v43_v17 }
  0x24   :  { %118 = vmatpush.msra.mxu1 %v43_v17 }
  0x25   :  { %73 = vmatpush.msra.mxu0 %v42_v18 }
  0x26   :  { %119 = vmatpush.msra.mxu1 %v42_v18 }
  0x7a   :  { %v34_v21 = vpop.permute.xlu0 %33 }
  0x7b   :  { %vm38_vm0 = vcmp.eq.s32.totalorder %v31_v20, %v34_v21 }
  0x7c   :  { %102 = vmatmul.msk.f32.vlgmr.msra.gmra.mxu0 %vm38_vm0, %v183_v22 }
  0x82   :  { %v37_v23 = vpop.permute.xlu0 %36 }
  0x83   :  { %vm39_vm1 = vcmp.eq.s32.totalorder %v31_v20, %v37_v23 }
  0x84   :  { %103 = vmatmul.msk.f32.vlgmr.msra.gmra.mxu1 %vm39_vm1, %v183_v22 }
  0xf9   :  { %v75_v24 = vpop.f32.mrf.mxu0 }
  0xfa   :  { %81 = vst [vmem:[#allocation5] sm:$0xff] %v75_v24 }
 0x101   :  { %v78_v25 = vpop.f32.mrf.mxu1 }
 0x102   :  { %82 = vst [vmem:[#allocation5 + $0x8] sm:$0xff] %v78_v25 }
 0x103   :  { %95 = dma.vmem_to_hbm [thread:$0]  %s88_s19, 256, %s90_s22, [#allocation4], %s180_s14, %s180_s14, %s181_s15  }
 0x104   :  { %177 = dma.done.wait [#allocation4], 256  }
 0x105   :  { %178 = vsyncadd [#allocation4], 4294967040 }
 0x106   :  { %100 = vsyncpa [#allocation3], 1 }
 0x107   :  { %101 = vsyncpa [#allocation4], 1 }

</bundles_post_ra>
